<compile_context>
chip_gen: v6e
topology: v6e:2x2x1
jax: 0.10.0
libtpu: 0.0.40
codegen_flags: <defaults>
</compile_context>

<pallas_src>
import numpy as np
import jax
import jax.numpy as jnp
from jax.experimental import pallas as pl
from jax.experimental.pallas import tpu as pltpu

_LANES = 128


# ----------------------------- Pallas kernel --------------------------------
def _hm_focal_kernel(phm_ref, thm_ref, out_ref):
    """Focal-with-logits partial sums over one (tb, tr, 128) tile.

    out_ref : f32[1, 2, 8, 128] per-batch-block resident accumulator
        [0] focal loss (pos + neg)      [1] num_pos
    The block index only depends on the batch-block axis, so the buffer stays
    resident across the row axis (accumulator pattern) and the batch axis can
    be megacore-parallel.
    """
    r = pl.program_id(1)

    @pl.when(r == 0)
    def _init():
        out_ref[...] = jnp.zeros_like(out_ref)

    x = phm_ref[...].astype(jnp.float32)      # (tb, tr, 128) heatmap logits
    obj = thm_ref[...]                        # (tb, tr, 128) target heatmap f32

    # Exact 1.0 compare matches torch obj.eq(1); padded positions use obj==2.0
    # so both masks are zero there and padding contributes nothing.
    pos = (obj == 1.0).astype(jnp.float32)
    neg = (obj < 1.0).astype(jnp.float32)
    neg_w = (1.0 - obj) ** 4

    # Stable focal-with-logits with ~3 EUP transcendentals:
    #   e = exp(-|x|), l = log1p(e)
    #   log(sigmoid(x))  = min(x, 0) - l
    #   log(sigmoid(-x)) = min(x, 0) - x - l
    #   sigmoid(x)       = where(x >= 0, 1/(1+e), e/(1+e))
    e = jnp.exp(-jnp.abs(x))
    l1pe = jnp.log1p(e)
    min_x0 = jnp.minimum(x, 0.0)
    log_sig_x = min_x0 - l1pe
    log_sig_nx = min_x0 - x - l1pe
    # approx recip runs on the otherwise-idle EUP slot; ~1e-4 rel error is
    # irrelevant for a loss (kernel is HBM-bound anyway).
    inv_1pe = pl.reciprocal(1.0 + e, approx=True)
    p = jnp.where(x >= 0.0, inv_1pe, e * inv_1pe)

    one_m_p = 1.0 - p
    hm_elem = (-log_sig_x) * one_m_p * one_m_p * pos \
        + (-log_sig_nx) * p * p * neg_w * neg

    def acc_add(idx, t):
        # Fold to (8, 128) vregs with pure VPU adds; the expensive cross-lane
        # reduction of the tiny partials happens once in the JAX wrapper.
        m = t.shape[0] * t.shape[1]
        flat = t.reshape(m, _LANES)
        if m % 8 == 0:
            part = jnp.sum(flat.reshape(m // 8, 8, _LANES), axis=0)
            out_ref[0, idx, :, :] += part
        else:  # tiny tiles (m < 8): single sublane-reduce is fine
            out_ref[0, idx, 0:1, :] += jnp.sum(flat, axis=0, keepdims=True)

    acc_add(0, hm_elem)
    acc_add(1, pos)


def _pallas_hm_focal_sums(phm, thm, tb, tr, vmem_limit):
    n_pad, rows_pad, _ = phm.shape
    nb, nr = n_pad // tb, rows_pad // tr
    hm_spec = pl.BlockSpec((tb, tr, _LANES), lambda b, r: (b, r, 0))
    return pl.pallas_call(
        _hm_focal_kernel,
        out_shape=jax.ShapeDtypeStruct((nb, 2, 8, _LANES), jnp.float32),
        grid_spec=pltpu.PrefetchScalarGridSpec(
            num_scalar_prefetch=0,
            grid=(nb, nr),
            in_specs=[hm_spec, hm_spec],
            out_specs=pl.BlockSpec((1, 2, 8, _LANES), lambda b, r: (b, 0, 0, 0)),
        ),
        compiler_params=pltpu.CompilerParams(
            # batch-block axis is independent (per-block partials) -> parallel
            # so v7x megacore can split it; row axis accumulates -> arbitrary.
            dimension_semantics=("parallel", "arbitrary"),
            vmem_limit_bytes=vmem_limit,
        ),
    )(phm, thm)


# --------------------------- layout helpers ----------------------------------
def _tiling(P, n):
    """Generation-aware (rows_pad, tr, tb, nb, vmem_limit) for lane-dense layout."""
    rows = -(-P // _LANES)
    try:
        vmem_cap = int(getattr(pltpu.get_tpu_info(), "vmem_capacity_bytes", 0))
    except Exception:
        vmem_cap = 0
    if vmem_cap >= 100 * (1 << 20):        # v5e / v6e: 128 MiB VMEM per core
        pos_cap, vmem_limit = 4096, 64 * (1 << 20)
    else:                                   # v7x (64 MiB VMEM) or unknown
        pos_cap, vmem_limit = 2048, 40 * (1 << 20)

    if rows <= pos_cap:
        tr, rows_pad = rows, rows           # full 2nd-minor dim: no (8,.) constraint
        tb_cap = max(1, min(n, pos_cap // max(rows, 1)))
        # >=2 batch blocks (when n > 1) so the parallel axis can split on v7x;
        # near-equal blocks avoid the old "tb must divide n -> tb=1" cliff.
        nb = max(-(-n // tb_cap), 2 if n > 1 else 1)
        tb = -(-n // nb)
    else:
        tr = pos_cap                        # multiple of 8 -> valid f32 block
        rows_pad = -(-rows // tr) * tr
        tb, nb = 1, n
    return rows_pad, tr, tb, nb, vmem_limit


def _lane_dense_hm_pred(x, n_pad, rows_pad):
    """(N, 1, H, W) device preds -> (n_pad, rows_pad, 128) by pure reshape (+rare pad)."""
    n = x.shape[0]
    if not jnp.issubdtype(x.dtype, jnp.floating):
        x = x.astype(jnp.float32)           # bf16/f32 pass through (kernel upcasts)
    x = x.reshape(n, -1)
    P = x.shape[-1]
    P_pad = rows_pad * _LANES
    if P_pad != P or n_pad != n:
        # TODO(synk): device-side pad copy; typical CenterNet H*W is a multiple
        # of 128 and the batch split is exact, so this path rarely triggers.
        x = jnp.pad(x, ((0, n_pad - n), (0, P_pad - P)))
    return x.reshape(n_pad, rows_pad, _LANES)


def _lane_dense_hm_target(thm, n_pad, rows_pad):
    """numpy (N, H, W, 1) target heatmap -> jnp (n_pad, rows_pad, 128), pad=2.0."""
    n = thm.shape[0]
    t = thm.reshape(n, -1).astype(np.float32)
    P = t.shape[-1]
    P_pad = rows_pad * _LANES
    full = np.full((n_pad, P_pad), 2.0, np.float32)   # pad -> neither pos nor neg
    full[:n, :P] = t
    return jnp.asarray(full.reshape(n_pad, rows_pad, _LANES))


# ------------------------------- module --------------------------------------
class CenterNetLoss:
    """JAX/Pallas port of the PyTorch `Loss` module (no learnable params)."""

    def __init__(self, image_size):
        self.image_size = image_size
        self.hm_weight = 1.0
        self.wh_weight = 0.1
        self.off_weight = 1.0

    # ------------- target encoding (host-side, matches torch exactly) -------
    # TODO(synk): encode/draw_gaussian is a per-object, variable-size Gaussian
    # scatter with data-dependent slice bounds; no clean Pallas equivalent, so
    # it stays host-side numpy (same python loops as the PyTorch reference).
    # For real sizes, transferring only the per-object arrays and scattering
    # the dense heatmap on device would also remove the PCIe bottleneck.
    @staticmethod
    def draw_gaussian(thm, gi, gj, dimension):
        for x, y, (l, t, r, b) in zip(gi, gj, dimension):
            w = max(l, r)
            h = max(t, b)
            gx = np.arange(-w, w + 1)
            gy = np.arange(-h, h + 1)
            grid_y, grid_x = np.meshgrid(gy, gx, indexing='ij')
            sigma_x = max(w, 1) / 2
            sigma_y = max(h, 1) / 2
            gaussian = np.exp(-grid_x ** 2 / (2 * sigma_x ** 2)
                              - grid_y ** 2 / (2 * sigma_y ** 2))
            patch = thm[y - t:y + b + 1, x - l:x + r + 1, :]
            thm[y - t:y + b + 1, x - l:x + r + 1, :] = np.maximum(
                patch, gaussian[h - t:h + b + 1, w - l:w + r + 1, None])

    def encode(self, centers, dimensions, out_w, out_h):
        num_samples = len(centers)
        thm = np.zeros((num_samples, out_h, out_w, 1), np.float32)
        twh = np.zeros((num_samples, out_h, out_w, 4), np.float32)
        treg = np.zeros((num_samples, out_h, out_w, 2), np.float32)
        width, height = self.image_size
        ratio = np.array([width / out_w, height / out_h], np.float64)
        for i, (center, dimension) in enumerate(zip(centers, dimensions)):
            center = np.asarray(center, np.float64) / ratio[None, :]
            dimension = np.asarray(dimension, np.float64) / np.tile(ratio, 2)[None, :]
            gi = center[:, 0].astype(np.int64)
            gj = center[:, 1].astype(np.int64)
            self.draw_gaussian(thm[i], gi, gj, dimension.astype(np.int64))
            twh[i, gj, gi, :] = dimension
            treg[i, gj, gi, :] = center - center.astype(np.int64)
        return thm, twh, treg

    # --------------------------- forward ------------------------------------
    def __call__(self, preds_hm, preds_wh, preds_reg, centers, dimensions):
        n, _, out_h, out_w = preds_hm.shape
        thm, twh, treg = self.encode(centers, dimensions, out_w, out_h)

        P = out_h * out_w
        rows_pad, tr, tb, nb, vmem_limit = _tiling(P, n)
        n_pad = nb * tb

        # ---- dense focal heatmap loss: Pallas kernel streams phm + thm only --
        phm = _lane_dense_hm_pred(preds_hm, n_pad, rows_pad)
        thm_d = _lane_dense_hm_target(thm, n_pad, rows_pad)
        parts = _pallas_hm_focal_sums(phm, thm_d, tb, tr, vmem_limit)
        sums = jnp.sum(parts, axis=(0, 2, 3))        # tiny (nb,2,8,128) -> (2,)
        hm_sum, num_pos = sums[0], sums[1]

        # ---- sparse wh / offset L1 over the K object-center positions --------
        # (mask = thm == 1 is extremely sparse; a K-element gather replaces
        #  48 B/pos of dense wh/off HBM traffic in the old kernel.)
        pos_b, pos_j, pos_i = np.nonzero(thm[..., 0] == 1.0)
        b_idx = jnp.asarray(pos_b.astype(np.int32))
        p_idx = jnp.asarray((pos_j * out_w + pos_i).astype(np.int32))
        twh_at = jnp.asarray(twh[pos_b, pos_j, pos_i, :], jnp.float32)    # (K,4)
        treg_at = jnp.asarray(treg[pos_b, pos_j, pos_i, :], jnp.float32)  # (K,2)
        pwh_at = preds_wh.reshape(n, 4, P)[b_idx, :, p_idx].astype(jnp.float32)
        preg_at = preds_reg.reshape(n, 2, P)[b_idx, :, p_idx].astype(jnp.float32)
        wh_sum = jnp.sum(jnp.abs(pwh_at - twh_at))
        off_sum = jnp.sum(jnp.abs(preg_at - treg_at))

        num_pos_safe = jnp.maximum(num_pos, 1.0)     # NaN guard for all 3 terms
        hm_loss = hm_sum / num_pos_safe
        # mask.size(0) == TRUE batch size n (not padded); mask.sum() == num_pos
        wh_loss = wh_sum * n / num_pos_safe
        off_loss = off_sum * n / num_pos_safe
        loss = (self.hm_weight * hm_loss
                + self.wh_weight * wh_loss
                + self.off_weight * off_loss)
        stats = {'loss': loss, 'hm_loss': hm_loss,
                 'wh_loss': wh_loss, 'off_loss': off_loss}
        return loss, stats


if __name__ == "__main__":
    key = jax.random.PRNGKey(0)
    N, H, W = 2, 16, 16
    image_size = (64, 64)          # (width, height) -> 4x downsample to 16x16

    k1, k2, k3 = jax.random.split(key, 3)
    preds_hm = jax.random.normal(k1, (N, 1, H, W), jnp.float32)
    preds_wh = jax.random.normal(k2, (N, 4, H, W), jnp.float32)
    preds_reg = jax.random.normal(k3, (N, 2, H, W), jnp.float32)

    # ground truth in image coordinates: per-sample object centers (cx, cy)
    # and box extents (l, t, r, b)
    centers = [np.array([[20.0, 24.0], [44.0, 40.0]]),
               np.array([[32.0, 32.0]])]
    dimensions = [np.array([[8.0, 8.0, 8.0, 8.0], [8.0, 12.0, 8.0, 12.0]]),
                  np.array([[12.0, 8.0, 12.0, 8.0]])]

    loss_fn = CenterNetLoss(image_size)
    loss, stats = loss_fn(preds_hm, preds_wh, preds_reg, centers, dimensions)
    loss = jax.block_until_ready(loss)

    # ---- pure-JAX reference for verification -------------------------------
    thm, twh, treg = loss_fn.encode(centers, dimensions, W, H)
    phm_r = jnp.transpose(preds_hm, (0, 2, 3, 1)).reshape(-1, 1)
    pwh_r = jnp.transpose(preds_wh, (0, 2, 3, 1)).reshape(-1, 4)
    preg_r = jnp.transpose(preds_reg, (0, 2, 3, 1)).reshape(-1, 2)
    thm_r = jnp.asarray(thm).reshape(-1, 1)
    twh_r = jnp.asarray(twh).reshape(-1, 4)
    treg_r = jnp.asarray(treg).reshape(-1, 2)

    pos_inds = (thm_r == 1.0).astype(jnp.float32)
    neg_inds = (thm_r < 1.0).astype(jnp.float32)
    p = jax.nn.sigmoid(phm_r)
    pos_l = jnp.sum(-jax.nn.log_sigmoid(phm_r) * (1 - p) ** 2 * pos_inds)
    neg_l = jnp.sum(-jax.nn.log_sigmoid(-phm_r) * p ** 2
                    * (1 - thm_r) ** 4 * neg_inds)
    num_pos = jnp.sum(pos_inds)
    hm_ref = (pos_l + neg_l) / jnp.maximum(num_pos, 1.0)
    wh_ref = jnp.sum(jnp.abs(pwh_r - twh_r) * pos_inds) * N / num_pos
    off_ref = jnp.sum(jnp.abs(preg_r - treg_r) * pos_inds) * N / num_pos
    loss_ref = 1.0 * hm_ref + 0.1 * wh_ref + 1.0 * off_ref

    # hm/total tolerance loosened for pl.reciprocal(approx=True) (~1e-4 rel);
    # wh/off never touch the approx path and must match tightly.
    np.testing.assert_allclose(float(loss), float(loss_ref), rtol=5e-3, atol=1e-4)
    np.testing.assert_allclose(float(stats['hm_loss']), float(hm_ref),
                               rtol=5e-3, atol=1e-4)
    np.testing.assert_allclose(float(stats['wh_loss']), float(wh_ref),
                               rtol=2e-5, atol=1e-5)
    np.testing.assert_allclose(float(stats['off_loss']), float(off_ref),
                               rtol=2e-5, atol=1e-5)
    print("KERNEL_OK")
</pallas_src>

<mosaic_0001>
module attributes {stable_mosaic.version = 11 : i64} {
  func.func @_hm_focal_kernel(%arg0: i32, %arg1: i32, %arg2: memref<1x2x128xf32, #tpu.memory_space<vmem>>, %arg3: memref<1x2x128xf32, #tpu.memory_space<vmem>>, %arg4: memref<1x2x8x128xf32, #tpu.memory_space<vmem>>) attributes {dimension_semantics = [#tpu.dimension_semantics<parallel>, #tpu.dimension_semantics<arbitrary>], iteration_bounds = array<i64: 2, 1>, scalar_prefetch = 0 : i64, scratch_operands = 0 : i64, tpu.core_type = #tpu.core_type<tc>, window_params = [{transform_indices = @transform_0, window_bounds = array<i64: 1, 2, 128>}, {transform_indices = @transform_1, window_bounds = array<i64: 1, 2, 128>}, {transform_indices = @transform_2, window_bounds = array<i64: 1, 2, 8, 128>}]} {
    %c0_i32 = arith.constant 0 : i32
    %0 = arith.cmpi eq, %arg1, %c0_i32 : i32
    %1 = arith.extui %0 : i1 to i32
    %c0_i32_0 = arith.constant 0 : i32
    %2 = arith.cmpi ne, %1, %c0_i32_0 : i32
    scf.if %2 {
      %cst_32 = arith.constant 0.000000e+00 : f32
      %66 = vector.broadcast %cst_32 : f32 to vector<1x2x8x128xf32>
      %c0_33 = arith.constant 0 : index
      %c0_34 = arith.constant 0 : index
      %c0_35 = arith.constant 0 : index
      %c0_36 = arith.constant 0 : index
      %67 = vector.load %arg4[%c0_33, %c0_34, %c0_35, %c0_36] : memref<1x2x8x128xf32, #tpu.memory_space<vmem>>, vector<1x2x8x128xf32>
      tpu.vector_store %arg4[%c0_33, %c0_34, %c0_35, %c0_36], %66 {strides = array<i32>} : memref<1x2x8x128xf32, #tpu.memory_space<vmem>>, vector<1x2x8x128xf32>,
    } else {
    }
    %c0 = arith.constant 0 : index
    %c0_1 = arith.constant 0 : index
    %c0_2 = arith.constant 0 : index
    %3 = vector.load %arg2[%c0, %c0_1, %c0_2] : memref<1x2x128xf32, #tpu.memory_space<vmem>>, vector<1x2x128xf32>
    %c0_3 = arith.constant 0 : index
    %c0_4 = arith.constant 0 : index
    %c0_5 = arith.constant 0 : index
    %4 = vector.load %arg3[%c0_3, %c0_4, %c0_5] : memref<1x2x128xf32, #tpu.memory_space<vmem>>, vector<1x2x128xf32>
    %cst = arith.constant 1.000000e+00 : f32
    %5 = vector.broadcast %cst : f32 to vector<1x2x128xf32>
    %6 = arith.cmpf oeq, %4, %5 : vector<1x2x128xf32>
    %7 = arith.extui %6 : vector<1x2x128xi1> to vector<1x2x128xi32>
    %8 = arith.sitofp %7 : vector<1x2x128xi32> to vector<1x2x128xf32>
    %cst_6 = arith.constant 1.000000e+00 : f32
    %9 = vector.broadcast %cst_6 : f32 to vector<1x2x128xf32>
    %10 = arith.cmpf olt, %4, %9 : vector<1x2x128xf32>
    %11 = arith.extui %10 : vector<1x2x128xi1> to vector<1x2x128xi32>
    %12 = arith.sitofp %11 : vector<1x2x128xi32> to vector<1x2x128xf32>
    %cst_7 = arith.constant 1.000000e+00 : f32
    %13 = vector.broadcast %cst_7 : f32 to vector<1x2x128xf32>
    %14 = arith.subf %13, %4 : vector<1x2x128xf32>
    %15 = arith.mulf %14, %14 : vector<1x2x128xf32>
    %16 = arith.mulf %15, %15 : vector<1x2x128xf32>
    %17 = math.absf %3 : vector<1x2x128xf32>
    %cst_8 = arith.constant 0.000000e+00 : f32
    %18 = vector.broadcast %cst_8 : f32 to vector<1x2x128xf32>
    %19 = arith.subf %18, %17 : vector<1x2x128xf32>
    %20 = math.exp %19 : vector<1x2x128xf32>
    %21 = math.log1p %20 : vector<1x2x128xf32>
    %cst_9 = arith.constant 0.000000e+00 : f32
    %22 = vector.broadcast %cst_9 : f32 to vector<1x2x128xf32>
    %23 = arith.minimumf %3, %22 : vector<1x2x128xf32>
    %24 = arith.subf %23, %21 : vector<1x2x128xf32>
    %25 = arith.subf %23, %3 : vector<1x2x128xf32>
    %26 = arith.subf %25, %21 : vector<1x2x128xf32>
    %cst_10 = arith.constant 1.000000e+00 : f32
    %27 = vector.broadcast %cst_10 : f32 to vector<1x2x128xf32>
    %28 = arith.addf %27, %20 : vector<1x2x128xf32>
    %29 = tpu.reciprocal %28 {approx = true} : vector<1x2x128xf32> -> vector<1x2x128xf32>
    %cst_11 = arith.constant 0.000000e+00 : f32
    %30 = vector.broadcast %cst_11 : f32 to vector<1x2x128xf32>
    %31 = arith.cmpf oge, %3, %30 : vector<1x2x128xf32>
    %32 = arith.mulf %20, %29 : vector<1x2x128xf32>
    %33 = arith.select %31, %29, %32 : vector<1x2x128xi1>, vector<1x2x128xf32>
    %cst_12 = arith.constant 1.000000e+00 : f32
    %34 = vector.broadcast %cst_12 : f32 to vector<1x2x128xf32>
    %35 = arith.subf %34, %33 : vector<1x2x128xf32>
    %cst_13 = arith.constant 0.000000e+00 : f32
    %36 = vector.broadcast %cst_13 : f32 to vector<1x2x128xf32>
    %37 = arith.subf %36, %24 : vector<1x2x128xf32>
    %38 = arith.mulf %37, %35 : vector<1x2x128xf32>
    %39 = arith.mulf %38, %35 : vector<1x2x128xf32>
    %40 = arith.mulf %39, %8 : vector<1x2x128xf32>
    %cst_14 = arith.constant 0.000000e+00 : f32
    %41 = vector.broadcast %cst_14 : f32 to vector<1x2x128xf32>
    %42 = arith.subf %41, %26 : vector<1x2x128xf32>
    %43 = arith.mulf %42, %33 : vector<1x2x128xf32>
    %44 = arith.mulf %43, %33 : vector<1x2x128xf32>
    %45 = arith.mulf %44, %16 : vector<1x2x128xf32>
    %46 = arith.mulf %45, %12 : vector<1x2x128xf32>
    %47 = arith.addf %40, %46 : vector<1x2x128xf32>
    %48 = vector.shape_cast %47 : vector<1x2x128xf32> to vector<2x128xf32>
    %c0_15 = arith.constant 0 : index
    %c0_16 = arith.constant 0 : index
    %c0_17 = arith.constant 0 : index
    %c0_18 = arith.constant 0 : index
    %49 = vector.load %arg4[%c0_15, %c0_16, %c0_17, %c0_18] : memref<1x2x8x128xf32, #tpu.memory_space<vmem>>, vector<1x1x1x128xf32>
    %50 = vector.shape_cast %49 : vector<1x1x1x128xf32> to vector<1x128xf32>
    %cst_19 = arith.constant dense<0.000000e+00> : vector<128xf32>
    %51 = vector.multi_reduction <add>, %48, %cst_19 [0] : vector<2x128xf32> to vector<128xf32>
    %52 = vector.shape_cast %51 : vector<128xf32> to vector<1x128xf32>
    %53 = arith.addf %50, %52 : vector<1x128xf32>
    %c0_20 = arith.constant 0 : index
    %c0_21 = arith.constant 0 : index
    %c0_22 = arith.constant 0 : index
    %c0_23 = arith.constant 0 : index
    %54 = vector.load %arg4[%c0_20, %c0_21, %c0_22, %c0_23] : memref<1x2x8x128xf32, #tpu.memory_space<vmem>>, vector<1x1x1x128xf32>
    %55 = vector.shape_cast %54 : vector<1x1x1x128xf32> to vector<1x128xf32>
    %56 = vector.shape_cast %53 : vector<1x128xf32> to vector<1x1x1x128xf32>
    tpu.vector_store %arg4[%c0_20, %c0_21, %c0_22, %c0_23], %56 {strides = array<i32>} : memref<1x2x8x128xf32, #tpu.memory_space<vmem>>, vector<1x1x1x128xf32>,
    %57 = vector.shape_cast %8 : vector<1x2x128xf32> to vector<2x128xf32>
    %c0_24 = arith.constant 0 : index
    %c1 = arith.constant 1 : index
    %c0_25 = arith.constant 0 : index
    %c0_26 = arith.constant 0 : index
    %58 = vector.load %arg4[%c0_24, %c1, %c0_25, %c0_26] : memref<1x2x8x128xf32, #tpu.memory_space<vmem>>, vector<1x1x1x128xf32>
    %59 = vector.shape_cast %58 : vector<1x1x1x128xf32> to vector<1x128xf32>
    %cst_27 = arith.constant dense<0.000000e+00> : vector<128xf32>
    %60 = vector.multi_reduction <add>, %57, %cst_27 [0] : vector<2x128xf32> to vector<128xf32>
    %61 = vector.shape_cast %60 : vector<128xf32> to vector<1x128xf32>
    %62 = arith.addf %59, %61 : vector<1x128xf32>
    %c0_28 = arith.constant 0 : index
    %c1_29 = arith.constant 1 : index
    %c0_30 = arith.constant 0 : index
    %c0_31 = arith.constant 0 : index
    %63 = vector.load %arg4[%c0_28, %c1_29, %c0_30, %c0_31] : memref<1x2x8x128xf32, #tpu.memory_space<vmem>>, vector<1x1x1x128xf32>
    %64 = vector.shape_cast %63 : vector<1x1x1x128xf32> to vector<1x128xf32>
    %65 = vector.shape_cast %62 : vector<1x128xf32> to vector<1x1x1x128xf32>
    tpu.vector_store %arg4[%c0_28, %c1_29, %c0_30, %c0_31], %65 {strides = array<i32>} : memref<1x2x8x128xf32, #tpu.memory_space<vmem>>, vector<1x1x1x128xf32>,
    return
  }
  func.func @transform_0(%arg0: i32, %arg1: i32) -> (i32, i32, i32) {
    %c0_i32 = arith.constant 0 : i32
    %c0_i32_0 = arith.constant 0 : i32
    return %arg0, %arg1, %c0_i32 : i32, i32, i32
  }
  func.func @transform_1(%arg0: i32, %arg1: i32) -> (i32, i32, i32) {
    %c0_i32 = arith.constant 0 : i32
    %c0_i32_0 = arith.constant 0 : i32
    return %arg0, %arg1, %c0_i32 : i32, i32, i32
  }
  func.func @transform_2(%arg0: i32, %arg1: i32) -> (i32, i32, i32, i32) {
    %c0_i32 = arith.constant 0 : i32
    %c0_i32_0 = arith.constant 0 : i32
    %c0_i32_1 = arith.constant 0 : i32
    %c0_i32_2 = arith.constant 0 : i32
    return %arg0, %c0_i32, %c0_i32_0, %c0_i32_1 : i32, i32, i32, i32
  }
}

</mosaic_0001>

<bundles_post_ra>
// kernel: tpu_custom_call.1
= control target key start
LH: loop header
LB: loop body
LE: loop exit
PB: predicated region body
PF: predicated region fallthrough
CT: control target
= control target key end

     0   :  { %7 = vsyncpa [#allocation3], 0  ;;  %s854_s0 = inlined_call_operand.hbm [shape: f32[2,2,128], index: 0, kind: input, shape index: {}]   ;;  %s855_s1 = inlined_call_operand.hbm [shape: f32[2,2,128], index: 1, kind: input, shape index: {}]   ;;  %s856_s2 = inlined_call_operand.hbm [shape: f32[2,2,8,128], index: 2, kind: output, shape index: {}]  }
   0x1   :  { %9 = vsyncpa [#allocation3 + $0x1], 0 }
   0x2   :  { %10 = vsyncpa [#allocation6], 0 }
   0x3   :  { %12 = vsyncpa [#allocation6 + $0x1], 0 }
   0x4   :  { %13 = vsyncpa [#allocation4], 0 }
   0x5   :  { %15 = vsyncpa [#allocation4 + $0x1], 0  ;;  %s667_s9 = smov 0   ;;  %s669_s10 = smov 0  }
   0x6   :  { %s671_s11 = smov 0   ;;  %s673_s12 = smov 0  }
   0x7   :  { %s675_s13 = smov 0   ;;  %s677_s14 = smov 0  }
   0x8 LB: > { %s406_s15 = sadd.s32 4294967295, %s644_s14   ;;  %s407_s16 = sadd.s32 4294967294, %s644_s14   ;;  %s644_s14 = sphi %s677_s14, %s21_s14   ;;  %s640_s13 = sphi %s675_s13, %s868_s13   ;;  %s636_s12 = sphi %s673_s12, %s867_s12   ;;  %s632_s11 = sphi %s671_s11, %s866_s11   ;;  %s628_s10 = sphi %s669_s10, %s865_s10   ;;  %s624_s9 = sphi %s667_s9, %s864_s9  }
   0x9   : > { %s33_s17 = sadd.s32 1, %s640_s13  ;;  %s42_s18 = sadd.s32 1, %s632_s11 }
   0xa   : > { %p35_p0 = scmp.ge.s32.totalorder %s33_s17, 2  ;;  %p49_p1 = scmp.ne.s32.totalorder %s632_s11, %s628_s10 }
   0xb   : > { %p50_p2 = scmp.eq.s32.totalorder %s644_s14, 0  ;;  %p55_p3 = scmp.ne.s32.totalorder %s628_s10, %s624_s9 }
   0xc   : > { %s870_s17 = smov (%p35_p0, %s33_s17), 0  ;;  %p56_p5 = scmp.eq.s32.totalorder %s406_s15, 0 }
   0xd   : > { %p708_p4 = por %p50_p2, %p49_p1  ;;  %s37_s20 = ssub.s32 %s640_s13, %s870_s17 }
   0xe   : > { %p107_p6 = scmp.eq.s32.totalorder %s406_s15, 1  ;;  %p40_p7 = scmp.eq.s32.totalorder %s37_s20, 0 }
   0xf   : > { %p714_p8 = por %p56_p5, %p55_p3  ;;  %p113_p10 = scmp.eq.s32.totalorder %s407_s16, 1 }
  0x10   : > { %p718_p9 = por %p107_p6, %p49_p1  ;;  %p445_p13 = scmp.lt.s32.totalorder %s644_s14, 2 }
  0x11   : > { %s723_s23 = scalar_select %p40_p7, %s632_s11, %s42_s18  }
  0x12   : > { %p725_p11 = por %p113_p10, %p55_p3  ;;  %s732_s25 = sand.u32 1, %s632_s11  }
  0x13   : > { %s410_s26 = sshll.u32 %s732_s25, 1  ;;  %s411_s27 = sshll.u32 %s640_s13, 5 }
  0x14   : > { %s143_s30 = scalar_lea.hbm %s854_s0, %s411_s27  ;;  %s137_s3 = scalar_lea.vmem [#allocation2], %s410_s26 }
  0x15   : > { %s145_s4 = sshll.u32 %s137_s3, 4  ;;  %p741_p0 = pnand %p445_p13, %p708_p4  ;;  %s146_s4 = int_to_ptr.vmem [resolvable:$true] %s145_s4 }
  0x16   : > { %p414_p1 = scmp.ge.s32.totalorder %s644_s14, 1  ;;  %p169_p2 = scmp.lt.s32.totalorder %s644_s14, 3 }
  0x17   : > { %s134_s6 = scalar_lea.sflag [#allocation3], %s732_s25  ;;  %p506_p3 = pneg %p741_p0 }
  0x18   : > { %s517_s7 = scalar_lea.vmem %s146_s4, 32  ;;  %s646_s8 = smov [#allocation2]  }
  0x19   : > { %p518_p5 = scmp.ne.s32.totalorder %s146_s4, %s517_s7  ;;  %s522_s15 = sshll.u32 %s646_s8, 4  ;;  %s523_s15 = int_to_ptr.vmem [resolvable:$false] %s522_s15 }
  0x1a   : > { %s524_s16 = scalar_lea.vmem %s523_s15, 64  ;;  %p525_p4 = scmp.lt.s32.totalorder %s146_s4, %s523_s15 }
  0x1b   : > { %p520_p6 = pnand %p518_p5, %p506_p3  ;;  %p526_p10 = scmp.lt.s32.totalorder %s524_s16, %s517_s7 }
  0x1d   : > { %p521_p7 = pneg %p520_p6  ;;  %p527_p13 = por %p526_p10, %p525_p4 }
  0x1f   : > { %p528_p12 = pnand %p527_p13, %p521_p7 }
  0x21   : > { %531 = shalt.err (!%p528_p12)
}
  0x22   : > { %437 = dma.hbm_to_vmem [thread:$0]  (!%p741_p0), %s143_s30, 32, %s146_s4, %s134_s6  }
  0x23   : > { %p759_p5 = pnand %p414_p1, %p169_p2  ;;  %s162_s28 = scalar_lea.hbm %s855_s1, %s411_s27 }
  0x24   : > { %s156_s29 = scalar_lea.vmem [#allocation5], %s410_s26  ;;  %s153_s7 = scalar_lea.sflag [#allocation6], %s732_s25 }
  0x25   : > { %s164_s3 = sshll.u32 %s156_s29, 4  ;;  %s647_s30 = smov [#allocation5]   ;;  %s165_s3 = int_to_ptr.vmem [resolvable:$true] %s164_s3 }
  0x26   : > { %s545_s8 = scalar_lea.vmem %s165_s3, 32  ;;  %s550_s4 = sshll.u32 %s647_s30, 4  ;;  %s551_s4 = int_to_ptr.vmem [resolvable:$false] %s550_s4 }
  0x27   : > { %p546_p12 = scmp.ne.s32.totalorder %s165_s3, %s545_s8  ;;  %s552_s6 = scalar_lea.vmem %s551_s4, 64 }
  0x28   : > { %p553_p1 = scmp.lt.s32.totalorder %s165_s3, %s551_s4  ;;  %p554_p2 = scmp.lt.s32.totalorder %s552_s6, %s545_s8 }
  0x29   : > { %p548_p6 = pnand %p546_p12, %p506_p3 }
  0x2a   : > { %p555_p4 = por %p554_p2, %p553_p1 }
  0x2b   : > { %p549_p7 = pneg %p548_p6 }
  0x2d   : > { %p556_p10 = pnand %p555_p4, %p549_p7 }
  0x2f   : > { %559 = shalt.err (!%p556_p10)
}
  0x30   : > { %440 = dma.hbm_to_vmem [thread:$0]  (!%p741_p0), %s162_s28, 32, %s165_s3, %s153_s7  }
  0x31   : > { %173 = sbr.rel (%p759_p5) target bundleno = 140 (0x8c), region = 28  ;;  %s775_s25 = sand.u32 (!%p759_p5), 1, %s628_s10  }
  0x32   : > { %s415_s26 = sshll.u32 (!%p759_p5), %s775_s25, 1  ;;  %s176_s27 = scalar_lea.sflag (!%p759_p5), [#allocation3], %s775_s25 }
  0x33   : > { %s179_s15 = scalar_lea.vmem (!%p759_p5), [#allocation2], %s415_s26 }
  0x36   : > { %611 = dma.done.wait (%p714_p8), %s176_s27, 32  }
  0x37   : > { %613 = vsyncadd (%p714_p8), %s176_s27, 4294967264  ;;  %s185_s5 = scalar_lea.sflag [#allocation6], %s775_s25  ;;  %s188_s16 = scalar_lea.vmem [#allocation5], %s415_s26 }
  0x38   : > { %615 = dma.done.wait (%p714_p8), %s185_s5, 32  }
  0x39   : > { %617 = vsyncadd (%p714_p8), %s185_s5, 4294967264  ;;  %s417_s18 = sshll.u32 %s775_s25, 4  ;;  %v648_v0 = vmov 0.0   ;;  %v220_v1 = vld [vmem:[%s179_s15] sm:$0x3]  ;;  %vm265_vm0 = vcmask 1041408  }
  0x3a   : > { %s789_s19 = scalar_lea.vmem [#allocation7], %s417_s18  ;;  %v221_v2 = vld [vmem:[%s188_s16] sm:$0x3]  ;;  %v231_v3 = vand.u32 2147483647, %v220_v1  ;;  %v244_v21 = vmin.f32 %v220_v1, 0.0 }
  0x3b   : > { %218 = vst [vmem:[%s789_s19] sm:$0xff] %v648_v0  ;;  %219 = vst [vmem:[%s789_s19 + $0x8] sm:$0xff] %v648_v0  ;;  %vm222_vm1 = vcmp.eq.f32.partialorder %v221_v2, 1.0  ;;  %v228_v24 = vsub.f32 1.0, %v221_v2  ;;  %vm250_vm3 = vcmp.ge.f32.partialorder %v220_v1, 0.0  ;;  %vm225_vm4 = vcmp.lt.f32.partialorder %v221_v2, 1.0  ;;  %s300_s21 = sshll.u32 %s789_s19, 4  ;;  %s800_s21 = int_to_ptr.vmem [resolvable:$true] %s300_s21 }
  0x3c   : > { %v418_v4 = vsel %vm222_vm1, 1.0, %v648_v0  ;;  %v232_v5 = vsub.f32 0.0, %v231_v3  ;;  %v246_v25 = vsub.f32 %v244_v21, %v220_v1  ;;  %v419_v42 = vsel %vm225_vm4, 1.0, %v648_v0  ;;  %s427_s20 = sshll.u32 %s636_s12, 8  ;;  %s287_s7 = scalar_lea.sflag [#allocation4], %s775_s25 }
  0x3d   : > { %v277_v6 = vsel %vm265_vm0, %v418_v4, 0.0  ;;  %v229_v30 = vmul.f32 %v228_v24, %v228_v24  ;;  %s805_s3 = scalar_lea.hbm %s856_s2, %s427_s20  ;;  %s560_s8 = scalar_lea.vmem %s800_s21, 256 }
  0x3e   : > { %v278_v7 = vrot.slane %v277_v6, 4  ;;  %v233_v8 = vmul.f32 1.442695, %v232_v5  ;;  %p561_p8 = scmp.ne.s32.totalorder %s800_s21, %s560_s8  ;;  %s649_s12 = smov [#allocation7]  }
  0x3f   : > { %v230_v37 = vmul.f32 %v229_v30, %v229_v30  ;;  %s564_s30 = sshll.u32 %s649_s12, 4  ;;  %s565_s30 = int_to_ptr.vmem [resolvable:$false] %s564_s30 }
  0x40   : > { %v279_v9 = vadd.f32 %v278_v7, %v277_v6  ;;  %498 = vpow2.f32 %v233_v8  ;;  %p562_p0 = pnand %p561_p8, %p718_p9  ;;  %s566_s4 = scalar_lea.vmem %s565_s30, 512 }
  0x41   : > { %p567_p13 = scmp.lt.s32.totalorder %s800_s21, %s565_s30  ;;  %p568_p5 = scmp.lt.s32.totalorder %s566_s4, %s560_s8 }
  0x42   : > { %v280_v10 = vrot.slane %v279_v9, 2  ;;  %v420_v13 = vld [vmem:[%s789_s19 + $0x8] sm:$0x1]  ;;  %v264_v53 = vld [vmem:[%s789_s19] sm:$0x1]  ;;  %p563_p3 = pneg %p562_p0 }
  0x43   : > { %p569_p12 = por %p568_p5, %p567_p13 }
  0x44   : > { %v281_v11 = vadd.f32 %v280_v10, %v279_v9 }
  0x45   : > { %p570_p6 = pnand %p569_p12, %p563_p3 }
  0x46   : > { %v282_v12 = vrot.slane %v281_v11, 1 }
  0x48   : > { %v283_v14 = vadd.f32 %v282_v12, %v281_v11 }
  0x4a   : > { %v284_v15 = vadd.f32 %v420_v13, %v283_v14 }
  0x4c   : > { %421 = vst [vmem:[%s789_s19 + $0x8] sm:$0x1] %v284_v15 }
  0x4d   : > { %v499_v16 = vpop.eup %498 }
  0x4e   : > { %v235_v17 = vadd.f32 1.0, %v499_v16  ;;  %v238_v18 = vmul.f32 -0.5, %v499_v16  ;;  %v241_v20 = vand.u32 2147483647, %v499_v16 }
  0x50   : > { %500 = vlog2.f32 %v235_v17  ;;  %v239_v19 = vadd.f32 1.0, %v238_v18  ;;  %vm242_vm2 = vcmp.lt.f32.partialorder %v241_v20, 0.0004427343 }
  0x51   : > { %502 = vrcp.f32 %v235_v17 }
  0x52   : > { %v240_v22 = vmul.f32 %v499_v16, %v239_v19 }
  0x5d   : > { %v501_v23 = vpop.eup %500 }
  0x5e   : > { %v503_v26 = vpop.eup %502  ;;  %v237_v27 = vmul.f32 0.6931472, %v501_v23 }
  0x5f   : > { %v251_v28 = vmul.f32 %v503_v26, %v499_v16 }
  0x60   : > { %v243_v29 = vsel %vm242_vm2, %v240_v22, %v237_v27 }
  0x61   : > { %v245_v31 = vsub.f32 %v244_v21, %v243_v29  ;;  %v247_v32 = vsub.f32 %v246_v25, %v243_v29  ;;  %v252_v33 = vsel %vm250_vm3, %v503_v26, %v251_v28 }
  0x62   : > { %v253_v34 = vsub.f32 1.0, %v252_v33 }
  0x63   : > { %v254_v35 = vsub.f32 0.0, %v245_v31  ;;  %v258_v36 = vsub.f32 0.0, %v247_v32 }
  0x65   : > { %v255_v38 = vmul.f32 %v254_v35, %v253_v34  ;;  %v259_v39 = vmul.f32 %v258_v36, %v252_v33 }
  0x67   : > { %v256_v40 = vmul.f32 %v255_v38, %v253_v34  ;;  %v260_v41 = vmul.f32 %v259_v39, %v252_v33 }
  0x69   : > { %v257_v43 = vmul.f32 %v418_v4, %v256_v40  ;;  %v261_v44 = vmul.f32 %v260_v41, %v230_v37 }
  0x6b   : > { %v262_v45 = vmul.f32 %v419_v42, %v261_v44 }
  0x6d   : > { %v263_v46 = vadd.f32 %v262_v45, %v257_v43 }
  0x6f   : > { %v266_v47 = vsel %vm265_vm0, %v263_v46, 0.0 }
  0x70   : > { %v267_v48 = vrot.slane %v266_v47, 4 }
  0x72   : > { %v268_v49 = vadd.f32 %v267_v48, %v266_v47 }
  0x74   : > { %v269_v50 = vrot.slane %v268_v49, 2 }
  0x76   : > { %v270_v51 = vadd.f32 %v269_v50, %v268_v49 }
  0x78   : > { %v271_v52 = vrot.slane %v270_v51, 1 }
  0x7a   : > { %v272_v54 = vadd.f32 %v271_v52, %v270_v51 }
  0x7c   : > { %v273_v55 = vadd.f32 %v272_v54, %v264_v53 }
  0x7e   : > { %274 = vst [vmem:[%s789_s19] sm:$0x1] %v273_v55 }
  0x7f   : > { %573 = shalt.err (!%p570_p6)
}
  0x80   : > { %s574_s6 = scalar_lea.hbm %s805_s3, 256  ;;  %s578_s15 = scalar_lea.hbm %s856_s2, 512 }
  0x81   : > { %p575_p7 = scmp.ne.s32.totalorder %s805_s3, %s574_s6  ;;  %p579_p4 = scmp.lt.s32.totalorder %s805_s3, %s856_s2 }
  0x82   : > { %p580_p10 = scmp.lt.s32.totalorder %s578_s15, %s574_s6 }
  0x83   : > { %p576_p1 = pnand %p575_p7, %p718_p9 }
  0x84   : > { %p581_p8 = por %p580_p10, %p579_p4 }
  0x85   : > { %p577_p2 = pneg %p576_p1 }
  0x87   : > { %p582_p0 = pnand %p581_p8, %p577_p2 }
  0x89   : > { %585 = shalt.err (!%p582_p0)
}
  0x8a   : > { %s650_s18 = smov 128   ;;  %s651_s19 = smov 8  }
  0x8b   : > { %432 = dma.vmem_to_hbm [thread:$0]  (%p718_p9), %s800_s21, 256, %s805_s3, %s287_s7, %s650_s18, %s650_s18, %s651_s19  }
  0x8c PF: > { %s315_s20 = sand.u32 1, %s624_s9   ;;  %p863_p3 = scmp.ge.s32.totalorder %s644_s14, 2 }
  0x8d   : > { %s316_s28 = scalar_lea.sflag [#allocation4], %s315_s20 }
  0x8e   : > { %p442_p13 = pnand %p863_p3, %p725_p11 }
  0x90   : > { %p443_p5 = pneg %p442_p13 }
  0x92   : > { %619 = dma.done.wait (%p443_p5), %s316_s28, 256  }
  0x93   : > { %621 = vsyncadd (%p443_p5), %s316_s28, 4294967040  ;;  %s21_s14 = sadd.s32 1, %s644_s14   ;;  %s864_s9 = smov %s628_s10 }
  0x94   : > { %p18_p12 = scmp.ge.s32.totalorder %s21_s14, 4   ;;  %s865_s10 = smov %s632_s11 }
  0x95   : > { %s866_s11 = smov %s723_s23  ;;  %s867_s12 = smov %s640_s13 }
  0x96   : > { %s868_s13 = smov %s870_s17  ;;  %20 = sbr.rel (!%p18_p12) target bundleno = 8 (0x8), region = 91 }
  0x9b   :  { %321 = vsyncpa [#allocation3], 1 }
  0x9c   :  { %323 = vsyncpa [#allocation3 + $0x1], 1 }
  0x9d   :  { %324 = vsyncpa [#allocation6], 1 }
  0x9e   :  { %326 = vsyncpa [#allocation6 + $0x1], 1 }
  0x9f   :  { %327 = vsyncpa [#allocation4], 1 }
  0xa0   :  { %329 = vsyncpa [#allocation4 + $0x1], 1 }

</bundles_post_ra>
